<compile_context>
chip_gen: v6e
topology: v6e:2x2x1
jax: 0.10.0
libtpu: 0.0.40
codegen_flags: <defaults>
</compile_context>

<pallas_src>
import functools

import jax
import jax.numpy as jnp
from jax.experimental import pallas as pl
from jax.experimental.pallas import tpu as pltpu

LANES = 128
SUBLANES = 8
ACC_ROWS = 32          # widened accumulator: 4 f32 vregs -> 4 independent add chains
BLOCK_ALIGN = 32       # block row multiple (covers f32/bf16/int8 sublane packing too)


def _round_up(x, m):
    return ((x + m - 1) // m) * m


def _tpu_kind():
    try:
        return jax.devices()[0].device_kind.lower()
    except Exception:
        return ""


def _mae_partial_kernel(o_ref, l_ref, out_ref, *, block_rows, steps_per_split,
                        rows_valid, needs_mask):
    s = pl.program_id(0)   # split (core-parallel on v7x, size 1 elsewhere)
    i = pl.program_id(1)   # reduction step within the split (arbitrary)

    @pl.when(i == 0)
    def _():
        out_ref[...] = jnp.zeros_like(out_ref)

    def accumulate(mask_rows):
        # Cast in-kernel (inputs arrive in native dtype; accumulate in f32).
        diff = o_ref[...].astype(jnp.float32) - l_ref[...].astype(jnp.float32)
        absd = jnp.abs(diff)
        if mask_rows:
            # Only the block straddling rows_valid pays for the iota/compare/where.
            row0 = (s * steps_per_split + i) * block_rows
            local = jax.lax.broadcasted_iota(jnp.int32, (block_rows, 1), 0)
            valid = (row0 + local) < rows_valid
            absd = jnp.where(valid, absd, 0.0)   # select after abs -> NaN-safe padding
        # (block_rows,128) -> (block_rows//32, 32, 128); summing axis 0 is 4
        # independent vreg add chains (no cross-lane work, no data movement).
        partial = absd.reshape(block_rows // ACC_ROWS, ACC_ROWS, LANES).sum(axis=0)
        out_ref[0, :, :] += partial

    if not needs_mask:
        accumulate(False)
    else:
        row0 = (s * steps_per_split + i) * block_rows
        full = row0 + block_rows <= rows_valid

        @pl.when(full)                                # interior block: unmasked path
        def _():
            accumulate(False)

        @pl.when(jnp.logical_and(jnp.logical_not(full), row0 < rows_valid))
        def _():                                      # straddling block: masked path
            accumulate(True)
        # Fully out-of-range (clamped duplicate) blocks fall through both: no compute.


def mean_absolute_error(outputs, labels, *, min_kernel_numel=1 << 18):
    """mean(|outputs - labels|) via a Pallas TPU streaming-reduce kernel."""
    assert outputs.shape == labels.shape, "l1_loss requires matching shapes here"
    numel = outputs.size
    out_dtype = jnp.result_type(outputs.dtype, labels.dtype)

    if numel == 0:
        # Matches torch.nn.functional.l1_loss on empty input (mean over 0 -> NaN).
        return jnp.full((), jnp.nan, out_dtype)

    flat_o = outputs.reshape(-1)
    flat_l = labels.reshape(-1)

    # Small-input fallback: fixed pallas_call dispatch cost dominates tiny tensors.
    if numel < min_kernel_numel:
        d = flat_o.astype(jnp.float32) - flat_l.astype(jnp.float32)
        return jnp.mean(jnp.abs(d)).astype(out_dtype)

    # --- dtype / generation-aware sizing ---------------------------------------
    it_o = min(max(jnp.dtype(outputs.dtype).itemsize, 1), 4)
    it_l = min(max(jnp.dtype(labels.dtype).itemsize, 1), 4)
    itemsize_min = min(it_o, it_l)            # narrowest dtype -> strictest packing
    itemsize_max = max(it_o, it_l)            # widest dtype -> largest DMA per row

    # Round the kernel-visible rows to the sublane packing factor of the narrowest
    # dtype (8 for f32, 16 for bf16, 32 for int8/fp8) so the slab never forces
    # packed-sublane layout fixups; the remainder is the JAX tail.
    row_align = SUBLANES * (4 // itemsize_min)
    rows = (numel // (LANES * row_align)) * row_align
    main = rows * LANES
    tail = numel - main

    kind = _tpu_kind()
    # Target DMA bytes per input per grid step: ~4 MiB on v6e/v7x (32 MiB scoped
    # VMEM default), ~2 MiB on v5e (16 MiB default). 2 inputs x 2 buffers fits.
    target_bytes = (2 << 20) if "v5" in kind else (4 << 20)
    block_rows_cap = max(BLOCK_ALIGN,
                         (target_bytes // (LANES * itemsize_max)) // BLOCK_ALIGN * BLOCK_ALIGN)
    num_tc = 2 if "v7" in kind else 1

    total = jnp.zeros((), jnp.float32)
    if tail:
        # Tiny ragged tail summed in plain JAX -> no full-array pad/copy in HBM.
        to = flat_o[main:].astype(jnp.float32)
        tl = flat_l[main:].astype(jnp.float32)
        total = total + jnp.sum(jnp.abs(to - tl))

    if rows:
        o2d = (flat_o[:main] if tail else flat_o).reshape(rows, LANES)
        l2d = (flat_l[:main] if tail else flat_l).reshape(rows, LANES)

        block_rows = min(block_rows_cap, _round_up(rows, BLOCK_ALIGN))
        steps = pl.cdiv(rows, block_rows)

        # Only split when there are 2 TensorCores and enough work per core.
        num_splits = 2 if (num_tc >= 2 and steps >= 4) else 1
        steps_per_split = pl.cdiv(steps, num_splits)
        # Mask needed if the last block is partial or the split over-covers the rows.
        needs_mask = (num_splits * steps_per_split * block_rows) != rows

        def in_map(s, i):
            # Clamp so over-coverage blocks (skipped in-kernel) re-read the last
            # valid block instead of going out of bounds.
            blk = jnp.minimum(s * steps_per_split + i, steps - 1)
            return (blk, 0)

        kernel = functools.partial(
            _mae_partial_kernel,
            block_rows=block_rows,
            steps_per_split=steps_per_split,
            rows_valid=rows,
            needs_mask=needs_mask,
        )

        split_sem = pltpu.CORE_PARALLEL if num_splits == 2 else pltpu.ARBITRARY

        partials = pl.pallas_call(
            kernel,
            out_shape=jax.ShapeDtypeStruct((num_splits, ACC_ROWS, LANES), jnp.float32),
            grid_spec=pltpu.PrefetchScalarGridSpec(
                num_scalar_prefetch=0,
                grid=(num_splits, steps_per_split),
                in_specs=[
                    pl.BlockSpec((block_rows, LANES), in_map),
                    pl.BlockSpec((block_rows, LANES), in_map),
                ],
                out_specs=pl.BlockSpec((1, ACC_ROWS, LANES), lambda s, i: (s, 0, 0)),
            ),
            compiler_params=pltpu.CompilerParams(
                dimension_semantics=(split_sem, pltpu.ARBITRARY),
            ),
        )(o2d, l2d)

        # Single cross-lane reduce, done once, outside the kernel.
        total = total + jnp.sum(partials)

    return (total / numel).astype(out_dtype)


if __name__ == "__main__":
    key = jax.random.PRNGKey(0)
    k1, k2, k3, k4, k5, k6 = jax.random.split(key, 6)

    # Small NCHW shapes consistent with the module's typical use.
    outputs = jax.random.normal(k1, (2, 4, 16, 16), dtype=jnp.float32)
    labels = jax.random.normal(k2, (2, 4, 16, 16), dtype=jnp.float32)
    # Force the Pallas kernel path even at this small size (default would fall back).
    loss = jax.block_until_ready(mean_absolute_error(outputs, labels, min_kernel_numel=0))
    ref = jnp.mean(jnp.abs(outputs - labels))
    assert jnp.allclose(loss, ref, rtol=1e-5, atol=1e-6), (loss, ref)

    # Odd-sized input: exercises the masked (partial-block) path plus the JAX tail.
    o2 = jax.random.normal(k3, (4, 1300), dtype=jnp.float32)
    l2 = jax.random.normal(k4, (4, 1300), dtype=jnp.float32)
    loss2 = jax.block_until_ready(mean_absolute_error(o2, l2, min_kernel_numel=0))
    ref2 = jnp.mean(jnp.abs(o2 - l2))
    assert jnp.allclose(loss2, ref2, rtol=1e-5, atol=1e-6), (loss2, ref2)

    # bf16 inputs: exercises native-dtype DMA with in-kernel f32 accumulation.
    o3 = jax.random.normal(k5, (2, 4, 32, 32), dtype=jnp.bfloat16)
    l3 = jax.random.normal(k6, (2, 4, 32, 32), dtype=jnp.bfloat16)
    loss3 = jax.block_until_ready(mean_absolute_error(o3, l3, min_kernel_numel=0))
    ref3 = jnp.mean(jnp.abs(o3.astype(jnp.float32) - l3.astype(jnp.float32)))
    assert jnp.allclose(loss3.astype(jnp.float32), ref3, rtol=2e-2, atol=2e-2), (loss3, ref3)

    print("KERNEL_OK")
</pallas_src>

<mosaic_0001>
module attributes {stable_mosaic.version = 11 : i64} {
  func.func @_mae_partial_kernel(%arg0: i32, %arg1: i32, %arg2: memref<32x128xf32, #tpu.memory_space<vmem>>, %arg3: memref<32x128xf32, #tpu.memory_space<vmem>>, %arg4: memref<1x32x128xf32, #tpu.memory_space<vmem>>) attributes {dimension_semantics = [#tpu.dimension_semantics<arbitrary>, #tpu.dimension_semantics<arbitrary>], iteration_bounds = array<i64: 1, 1>, scalar_prefetch = 0 : i64, scratch_operands = 0 : i64, tpu.core_type = #tpu.core_type<tc>, window_params = [{transform_indices = @transform_0, window_bounds = array<i64: 32, 128>}, {transform_indices = @transform_1, window_bounds = array<i64: 32, 128>}, {transform_indices = @transform_2, window_bounds = array<i64: 1, 32, 128>}]} {
    %c0_i32 = arith.constant 0 : i32
    %0 = arith.cmpi eq, %arg1, %c0_i32 : i32
    %1 = arith.extui %0 : i1 to i32
    %c0_i32_0 = arith.constant 0 : i32
    %2 = arith.cmpi ne, %1, %c0_i32_0 : i32
    scf.if %2 {
      %cst = arith.constant 0.000000e+00 : f32
      %15 = vector.broadcast %cst : f32 to vector<1x32x128xf32>
      %c0 = arith.constant 0 : index
      %c0_5 = arith.constant 0 : index
      %c0_6 = arith.constant 0 : index
      %16 = vector.load %arg4[%c0, %c0_5, %c0_6] : memref<1x32x128xf32, #tpu.memory_space<vmem>>, vector<1x32x128xf32>
      tpu.vector_store %arg4[%c0, %c0_5, %c0_6], %15 {strides = array<i32>} : memref<1x32x128xf32, #tpu.memory_space<vmem>>, vector<1x32x128xf32>,
    } else {
    }
    %c1_i32 = arith.constant 1 : i32
    %3 = arith.muli %arg0, %c1_i32 : i32
    %4 = arith.addi %3, %arg1 : i32
    %c32_i32 = arith.constant 32 : i32
    %5 = arith.muli %4, %c32_i32 : i32
    %c32_i32_1 = arith.constant 32 : i32
    %6 = arith.addi %5, %c32_i32_1 : i32
    %c16_i32 = arith.constant 16 : i32
    %7 = arith.cmpi sle, %6, %c16_i32 : i32
    %8 = arith.extui %7 : i1 to i32
    %c0_i32_2 = arith.constant 0 : i32
    %9 = arith.cmpi ne, %8, %c0_i32_2 : i32
    scf.if %9 {
      %c0 = arith.constant 0 : index
      %c0_5 = arith.constant 0 : index
      %15 = vector.load %arg2[%c0, %c0_5] : memref<32x128xf32, #tpu.memory_space<vmem>>, vector<32x128xf32>
      %c0_6 = arith.constant 0 : index
      %c0_7 = arith.constant 0 : index
      %16 = vector.load %arg3[%c0_6, %c0_7] : memref<32x128xf32, #tpu.memory_space<vmem>>, vector<32x128xf32>
      %17 = arith.subf %15, %16 : vector<32x128xf32>
      %18 = math.absf %17 : vector<32x128xf32>
      %19 = vector.shape_cast %18 : vector<32x128xf32> to vector<1x32x128xf32>
      %cst = arith.constant dense<0.000000e+00> : vector<32x128xf32>
      %20 = vector.multi_reduction <add>, %19, %cst [0] : vector<1x32x128xf32> to vector<32x128xf32>
      %c0_8 = arith.constant 0 : index
      %c0_9 = arith.constant 0 : index
      %c0_10 = arith.constant 0 : index
      %21 = vector.load %arg4[%c0_8, %c0_9, %c0_10] : memref<1x32x128xf32, #tpu.memory_space<vmem>>, vector<1x32x128xf32>
      %22 = vector.shape_cast %21 : vector<1x32x128xf32> to vector<32x128xf32>
      %23 = arith.addf %22, %20 : vector<32x128xf32>
      %c0_11 = arith.constant 0 : index
      %c0_12 = arith.constant 0 : index
      %c0_13 = arith.constant 0 : index
      %24 = vector.load %arg4[%c0_11, %c0_12, %c0_13] : memref<1x32x128xf32, #tpu.memory_space<vmem>>, vector<1x32x128xf32>
      %25 = vector.shape_cast %24 : vector<1x32x128xf32> to vector<32x128xf32>
      %26 = vector.shape_cast %23 : vector<32x128xf32> to vector<1x32x128xf32>
      tpu.vector_store %arg4[%c0_11, %c0_12, %c0_13], %26 {strides = array<i32>} : memref<1x32x128xf32, #tpu.memory_space<vmem>>, vector<1x32x128xf32>,
    } else {
    }
    %true = arith.constant true
    %10 = arith.xori %7, %true : i1
    %c16_i32_3 = arith.constant 16 : i32
    %11 = arith.cmpi slt, %5, %c16_i32_3 : i32
    %12 = arith.andi %10, %11 : i1
    %13 = arith.extui %12 : i1 to i32
    %c0_i32_4 = arith.constant 0 : i32
    %14 = arith.cmpi ne, %13, %c0_i32_4 : i32
    scf.if %14 {
      %c0 = arith.constant 0 : index
      %c0_5 = arith.constant 0 : index
      %15 = vector.load %arg2[%c0, %c0_5] : memref<32x128xf32, #tpu.memory_space<vmem>>, vector<32x128xf32>
      %c0_6 = arith.constant 0 : index
      %c0_7 = arith.constant 0 : index
      %16 = vector.load %arg3[%c0_6, %c0_7] : memref<32x128xf32, #tpu.memory_space<vmem>>, vector<32x128xf32>
      %17 = arith.subf %15, %16 : vector<32x128xf32>
      %18 = math.absf %17 : vector<32x128xf32>
      %c1_i32_8 = arith.constant 1 : i32
      %19 = arith.muli %arg0, %c1_i32_8 : i32
      %20 = arith.addi %19, %arg1 : i32
      %c32_i32_9 = arith.constant 32 : i32
      %21 = arith.muli %20, %c32_i32_9 : i32
      %22 = tpu.iota {dimensions = array<i32: 0>} : vector<32x1xi32>
      %23 = vector.broadcast %21 : i32 to vector<32x1xi32>
      %24 = arith.addi %23, %22 : vector<32x1xi32>
      %c16_i32_10 = arith.constant 16 : i32
      %25 = vector.broadcast %c16_i32_10 : i32 to vector<32x1xi32>
      %26 = arith.cmpi slt, %24, %25 : vector<32x1xi32>
      %cst = arith.constant 0.000000e+00 : f32
      %27 = vector.shape_cast %26 : vector<32x1xi1> to vector<32x1xi1>
      %28 = vector.broadcast %27 : vector<32x1xi1> to vector<32x128xi1>
      %29 = vector.broadcast %cst : f32 to vector<32x128xf32>
      %30 = arith.select %28, %18, %29 : vector<32x128xi1>, vector<32x128xf32>
      %31 = vector.shape_cast %30 : vector<32x128xf32> to vector<1x32x128xf32>
      %cst_11 = arith.constant dense<0.000000e+00> : vector<32x128xf32>
      %32 = vector.multi_reduction <add>, %31, %cst_11 [0] : vector<1x32x128xf32> to vector<32x128xf32>
      %c0_12 = arith.constant 0 : index
      %c0_13 = arith.constant 0 : index
      %c0_14 = arith.constant 0 : index
      %33 = vector.load %arg4[%c0_12, %c0_13, %c0_14] : memref<1x32x128xf32, #tpu.memory_space<vmem>>, vector<1x32x128xf32>
      %34 = vector.shape_cast %33 : vector<1x32x128xf32> to vector<32x128xf32>
      %35 = arith.addf %34, %32 : vector<32x128xf32>
      %c0_15 = arith.constant 0 : index
      %c0_16 = arith.constant 0 : index
      %c0_17 = arith.constant 0 : index
      %36 = vector.load %arg4[%c0_15, %c0_16, %c0_17] : memref<1x32x128xf32, #tpu.memory_space<vmem>>, vector<1x32x128xf32>
      %37 = vector.shape_cast %36 : vector<1x32x128xf32> to vector<32x128xf32>
      %38 = vector.shape_cast %35 : vector<32x128xf32> to vector<1x32x128xf32>
      tpu.vector_store %arg4[%c0_15, %c0_16, %c0_17], %38 {strides = array<i32>} : memref<1x32x128xf32, #tpu.memory_space<vmem>>, vector<1x32x128xf32>,
    } else {
    }
    return
  }
  func.func @transform_0(%arg0: i32, %arg1: i32) -> (i32, i32) {
    %c1_i32 = arith.constant 1 : i32
    %0 = arith.muli %arg0, %c1_i32 : i32
    %1 = arith.addi %0, %arg1 : i32
    %c0_i32 = arith.constant 0 : i32
    %2 = arith.minsi %1, %c0_i32 : i32
    %c0_i32_0 = arith.constant 0 : i32
    %c0_i32_1 = arith.constant 0 : i32
    return %2, %c0_i32_0 : i32, i32
  }
  func.func @transform_1(%arg0: i32, %arg1: i32) -> (i32, i32) {
    %c1_i32 = arith.constant 1 : i32
    %0 = arith.muli %arg0, %c1_i32 : i32
    %1 = arith.addi %0, %arg1 : i32
    %c0_i32 = arith.constant 0 : i32
    %2 = arith.minsi %1, %c0_i32 : i32
    %c0_i32_0 = arith.constant 0 : i32
    %c0_i32_1 = arith.constant 0 : i32
    return %2, %c0_i32_0 : i32, i32
  }
  func.func @transform_2(%arg0: i32, %arg1: i32) -> (i32, i32, i32) {
    %c0_i32 = arith.constant 0 : i32
    %c0_i32_0 = arith.constant 0 : i32
    %c0_i32_1 = arith.constant 0 : i32
    return %arg0, %c0_i32, %c0_i32_0 : i32, i32, i32
  }
}

</mosaic_0001>

<bundles_post_ra>
// kernel: tpu_custom_call.1
= control target key start
LH: loop header
LB: loop body
LE: loop exit
PB: predicated region body
PF: predicated region fallthrough
CT: control target
= control target key end

     0   :  { %7 = vsyncpa [#allocation3], 0  ;;  %s316_s0 = inlined_call_operand.hbm [shape: f32[16,128], index: 0, kind: input, shape index: {}]   ;;  %s317_s1 = inlined_call_operand.hbm [shape: f32[16,128], index: 1, kind: input, shape index: {}]   ;;  %s318_s2 = inlined_call_operand.hbm [shape: f32[1,32,128], index: 2, kind: output, shape index: {}]  }
   0x1   :  { %8 = vsyncpa [#allocation6], 0 }
   0x2   :  { %9 = vsyncpa [#allocation4], 0 }
   0x3   :  { %20 = vsyncadd [#allocation3], 256  ;;  %s277_s9 = smov [#allocation2]  }
   0x4   :  { %s25_s10 = sshll.u32 %s277_s9, 4  ;;  %s26_s10 = int_to_ptr.vmem [resolvable:$true] %s25_s10 }
   0x5   :  { %s219_s11 = scalar_lea.vmem %s26_s10, 256  ;;  %s223_s12 = scalar_lea.vmem %s26_s10, 512 }
   0x6   :  { %p220_p0 = scmp.ne.s32.totalorder %s26_s10, %s219_s11  ;;  %p224_p1 = scmp.lt.s32.totalorder %s26_s10, %s26_s10 }
   0x7   :  { %p225_p2 = scmp.lt.s32.totalorder %s223_s12, %s219_s11 }
   0x9   :  { %p226_p3 = por %p225_p2, %p224_p1 }
   0xb   :  { %p227_p4 = pnand %p226_p3, %p220_p0 }
   0xd   :  { %230 = shalt.err (!%p227_p4)
}
   0xe   :  { %s278_s13 = smov 128   ;;  %s279_s14 = smov 8  }
   0xf   :  { %31 = dma.hbm_to_vmem [thread:$0]  %s316_s0, 256, %s26_s10, [#allocation3], %s278_s13, %s278_s13, %s279_s14  }
  0x10   :  { %42 = vsyncadd [#allocation6], 256  ;;  %s280_s17 = smov [#allocation5]  }
  0x11   :  { %s47_s18 = sshll.u32 %s280_s17, 4  ;;  %s48_s18 = int_to_ptr.vmem [resolvable:$true] %s47_s18 }
  0x12   :  { %s239_s19 = scalar_lea.vmem %s48_s18, 256  ;;  %s243_s20 = scalar_lea.vmem %s48_s18, 512 }
  0x13   :  { %p240_p5 = scmp.ne.s32.totalorder %s48_s18, %s239_s19  ;;  %p244_p6 = scmp.lt.s32.totalorder %s48_s18, %s48_s18 }
  0x14   :  { %p245_p7 = scmp.lt.s32.totalorder %s243_s20, %s239_s19 }
  0x16   :  { %p246_p8 = por %p245_p7, %p244_p6 }
  0x18   :  { %p247_p9 = pnand %p246_p8, %p240_p5 }
  0x1a   :  { %250 = shalt.err (!%p247_p9)
}
  0x1b   :  { %53 = dma.hbm_to_vmem [thread:$0]  %s317_s1, 256, %s48_s18, [#allocation6], %s278_s13, %s278_s13, %s279_s14  }
  0x1c   :  { %271 = dma.done.wait [#allocation3], 512  }
  0x1d   :  { %272 = vsyncadd [#allocation3], 4294966784 }
  0x1e   :  { %273 = dma.done.wait [#allocation6], 512  }
  0x1f   :  { %274 = vsyncadd [#allocation6], 4294966784  ;;  %v281_v0 = vmov 0.0   ;;  %v125_v1 = vld [vmem:[#allocation2] sm:$0xff]  ;;  %v126_v3 = vld [vmem:[#allocation2 + $0x8] sm:$0xff]  ;;  %s282_s0 = smov [#allocation7]  }
  0x20   :  { %181 = vst [vmem:[#allocation7 + $0x10] sm:$0xff] %v281_v0  ;;  %182 = vst [vmem:[#allocation7 + $0x18] sm:$0xff] %v281_v0  ;;  %v129_v2 = vld [vmem:[#allocation5] sm:$0xff]  ;;  %v130_v5 = vld [vmem:[#allocation5 + $0x8] sm:$0xff]  ;;  %s188_s23 = sshll.u32 %s282_s0, 4  ;;  %s189_s23 = int_to_ptr.vmem [resolvable:$true] %s188_s23 }
  0x21   :  { %v133_v4 = vsub.f32 %v125_v1, %v129_v2  ;;  %v134_v6 = vsub.f32 %v126_v3, %v130_v5  ;;  %s251_s1 = scalar_lea.vmem %s189_s23, 512  ;;  %p256_p11 = scmp.lt.s32.totalorder %s189_s23, %s189_s23 }
  0x22   :  { %p252_p10 = scmp.ne.s32.totalorder %s189_s23, %s251_s1  ;;  %p257_p12 = scmp.lt.s32.totalorder %s251_s1, %s251_s1 }
  0x23   :  { %v137_v7 = vand.u32 2147483647, %v133_v4  ;;  %v138_v8 = vand.u32 2147483647, %v134_v6 }
  0x24   :  { %p258_p13 = por %p257_p12, %p256_p11 }
  0x25   :  { %179 = vst [vmem:[#allocation7] sm:$0xff] %v137_v7  ;;  %180 = vst [vmem:[#allocation7 + $0x8] sm:$0xff] %v138_v8 }
  0x26   :  { %p259_p0 = pnand %p258_p13, %p252_p10 }
  0x28   :  { %262 = shalt.err (!%p259_p0)
}
  0x29   :  { %194 = dma.vmem_to_hbm [thread:$0]  %s189_s23, 512, %s318_s2, [#allocation4], %s278_s13, %s278_s13, %s279_s14  }
  0x2a   :  { %275 = dma.done.wait [#allocation4], 512  }
  0x2b   :  { %276 = vsyncadd [#allocation4], 4294966784 }
  0x2c   :  { %198 = vsyncpa [#allocation3], 1 }
  0x2d   :  { %199 = vsyncpa [#allocation6], 1 }
  0x2e   :  { %200 = vsyncpa [#allocation4], 1 }

</bundles_post_ra>
